<compile_context>
chip_gen: v5e
topology: v5e:2x2
jax: 0.10.0
libtpu: 0.0.40
codegen_flags: <defaults>
</compile_context>

<pallas_src>
import jax
import jax.numpy as jnp
from jax.experimental import pallas as pl
from jax.experimental.pallas import tpu as pltpu

_MiB = 1024 * 1024


def _inc_dropout_kernel(w_ref, b_ref, x_ref, o_ref):
    # w_ref: (1, C_out, C_in)  per-sample conv weight with dropout mask folded in
    # b_ref: (C_out, 1)        conv bias (f32)
    # x_ref: (1, C_in,  TS)    spatial tile of one sample, channels on sublanes
    # o_ref: (1, C_out, TS)
    y = jnp.dot(w_ref[0], x_ref[0], preferred_element_type=jnp.float32)  # (C_out, TS)
    o_ref[0] = (y + b_ref[...]).astype(o_ref.dtype)


def _round_up(x, m):
    return -(-x // m) * m


def _sublane(itemsize):
    # rows per physical VMEM tile: f32 -> 8, bf16 -> 16, int8/fp8 -> 32
    return max(8, 32 // itemsize)


def _padded_block_bytes(rows, cols, itemsize):
    # physical VMEM footprint of one (rows, cols) block, padded to (sublane, 128)
    return _round_up(rows, _sublane(itemsize)) * _round_up(cols, 128) * itemsize


def _vmem_capacity_bytes():
    try:
        return int(pltpu.get_tpu_info().vmem_capacity_bytes)
    except Exception:
        return 64 * _MiB  # conservative fallback: v7x-sized VMEM per TensorCore


def _vmem_block_budget(vmem_cap_bytes):
    # Budget for the double-buffered x/out tiles: ~1/3 of per-core VMEM,
    # capped at 48 MiB -> ~42 MiB on v5e/v6e (128 MiB VMEM), ~21 MiB on v7x.
    return min(vmem_cap_bytes // 3, 48 * _MiB)


def _pick_tile_s(S_pad, c_in, c_out, itemsize, vmem_budget_bytes):
    """Largest multiple-of-128 spatial tile whose double-buffered input+output
    blocks fit the budget.  Channel counts are rounded up to the dtype sublane
    tile because VMEM blocks are physically padded to (sublane, 128) tiles."""
    sub = _sublane(itemsize)
    per_col = 2 * (_round_up(c_in, sub) + _round_up(c_out, sub)) * itemsize
    fit = max(128, (vmem_budget_bytes // per_col) // 128 * 128)
    return min(S_pad, fit)


def dropout3d_channel_mask(key, p, n, c, dtype=jnp.float32):
    """Dropout3d (training) channel-keep mask, pre-scaled by 1/(1-p).
    Guards the p >= 1.0 edge case (PyTorch returns zeros, not NaN)."""
    p = float(p)
    if p <= 0.0:
        return jnp.ones((n, c), dtype)
    if p >= 1.0:
        return jnp.zeros((n, c), dtype)
    keep = jax.random.bernoulli(key, 1.0 - p, (n, c))
    return jnp.where(keep, 1.0 / (1.0 - p), 0.0).astype(dtype)


def inc_dropout_forward(x_ncdhw, weight, bias, drop_mask, *, tile_s=None):
    """x_ncdhw: (N, C_in, D, H, W); weight: (C_out, C_in); bias: (C_out,);
    drop_mask: (N, C_in) Dropout3d channel-keep mask already scaled by 1/(1-p)."""
    N, C_in, D, H, W = x_ncdhw.shape
    C_out = weight.shape[0]
    S = D * H * W
    itemsize = x_ncdhw.dtype.itemsize

    # Free contiguous reshape NCDHW -> (N, C_in, S).  Pad the spatial axis up to
    # a multiple of 128 so every block (including the trailing one) is
    # lane-full and stores stay unmasked; sliced back off after the call.
    x = x_ncdhw.reshape(N, C_in, S)
    S_pad = _round_up(S, 128)
    if S_pad != S:
        x = jnp.pad(x, ((0, 0), (0, 0), (0, S_pad - S)))

    # Fold the per-(sample, channel) dropout mask into the conv weight in f32:
    # (W * diag(m_n)) @ x_n == W @ (m_n * x_n).  Exact for f32 inputs; for
    # low-precision inputs the 1/(1-p) scale rounds into the low-precision
    # weight (accepted -- keeps MXU operand dtypes matched).
    w_scaled = (weight.astype(jnp.float32)[None, :, :]
                * drop_mask.astype(jnp.float32)[:, None, :]).astype(x.dtype)
    b2 = bias.reshape(C_out, 1).astype(jnp.float32)

    # ---- Tiling policy -----------------------------------------------------
    vmem_cap = _vmem_capacity_bytes()
    if tile_s is None:
        tile_s = _pick_tile_s(S_pad, C_in, C_out, itemsize, _vmem_block_budget(vmem_cap))
    else:
        tile_s = min(S_pad, _round_up(int(tile_s), 128))

    # v7x has 2 TensorCores fed by sharding the "parallel" grid axes: make sure
    # there are >= 2 work units so one core doesn't idle.  v5e/v6e have 1 TC,
    # so a single big block stays optimal there (keyed off the 64 MiB VMEM).
    two_tensorcores = vmem_cap <= 64 * _MiB
    if two_tensorcores and N == 1 and tile_s >= S_pad and S_pad >= 256:
        tile_s = max(128, _round_up(-(-S_pad // 2), 128))

    num_s = pl.cdiv(S_pad, tile_s)

    # Explicit VMEM limit from the actual padded, double-buffered block
    # footprint plus headroom for Mosaic internal scratch.
    footprint = 2 * (_padded_block_bytes(C_in, tile_s, itemsize)
                     + _padded_block_bytes(C_out, tile_s, itemsize)
                     + _padded_block_bytes(C_out, C_in, itemsize)
                     + _padded_block_bytes(C_out, 1, 4))
    vmem_limit = int(min(max(footprint + 4 * _MiB, 32 * _MiB), vmem_cap - 8 * _MiB))

    out = pl.pallas_call(
        _inc_dropout_kernel,
        out_shape=jax.ShapeDtypeStruct((N, C_out, S_pad), x.dtype),
        grid_spec=pl.GridSpec(
            grid=(N, num_s),
            in_specs=[
                pl.BlockSpec((1, C_out, C_in), lambda n, s: (n, 0, 0)),
                pl.BlockSpec((C_out, 1), lambda n, s: (0, 0)),
                pl.BlockSpec((1, C_in, tile_s), lambda n, s: (n, 0, s)),
            ],
            out_specs=pl.BlockSpec((1, C_out, tile_s), lambda n, s: (n, 0, s)),
        ),
        compiler_params=pltpu.CompilerParams(
            # Both axes independent -> lets v7x shard the loop across its 2 TCs.
            dimension_semantics=("parallel", "parallel"),
            vmem_limit_bytes=vmem_limit,
        ),
    )(w_scaled, b2, x)

    if S_pad != S:
        out = out[:, :, :S]
    # Free contiguous reshape back to NCDHW.
    return out.reshape(N, C_out, D, H, W)


if __name__ == "__main__":
    key = jax.random.PRNGKey(0)
    k_x, k_w, k_b, k_drop = jax.random.split(key, 4)

    # small shapes consistent with the module
    N, C_in, C_out = 2, 4, 8
    D = H = W = 16
    dropout_p = 0.3

    x = jax.random.normal(k_x, (N, C_in, D, H, W), dtype=jnp.float32)

    # deterministic parameter init (Conv3d kernel_size=1 -> weight (C_out, C_in))
    fan_in = C_in  # * 1*1*1
    bound = 1.0 / jnp.sqrt(fan_in)
    weight = jax.random.uniform(k_w, (C_out, C_in), jnp.float32, -bound, bound)
    bias = jax.random.uniform(k_b, (C_out,), jnp.float32, -bound, bound)

    # Dropout3d (training mode): drop whole channels per sample, scale 1/(1-p).
    drop_mask = dropout3d_channel_mask(k_drop, dropout_p, N, C_in)

    # plain-JAX reference
    x_masked = x * drop_mask[:, :, None, None, None]
    y_ref = (jnp.einsum("ncdhw,oc->nodhw", x_masked, weight)
             + bias[None, :, None, None, None])

    # 1) auto-sized tile (whole spatial extent fits in one block here)
    y = inc_dropout_forward(x, weight, bias, drop_mask)
    y = jax.block_until_ready(y)
    assert y.shape == (N, C_out, D, H, W)
    assert jnp.allclose(y, y_ref, atol=1e-5, rtol=1e-5)

    # 2) explicitly tiled spatial axis (exercises the multi-step grid path)
    y2 = inc_dropout_forward(x, weight, bias, drop_mask, tile_s=512)
    y2 = jax.block_until_ready(y2)
    assert jnp.allclose(y2, y_ref, atol=1e-5, rtol=1e-5)

    print("KERNEL_OK")
</pallas_src>

<mosaic_0001>
module attributes {stable_mosaic.version = 11 : i64} {
  func.func @_inc_dropout_kernel(%arg0: i32, %arg1: i32, %arg2: memref<1x8x4xf32, #tpu.memory_space<vmem>>, %arg3: memref<8x1xf32, #tpu.memory_space<vmem>>, %arg4: memref<1x4x4096xf32, #tpu.memory_space<vmem>>, %arg5: memref<1x8x4096xf32, #tpu.memory_space<vmem>>) attributes {dimension_semantics = [#tpu.dimension_semantics<parallel>, #tpu.dimension_semantics<parallel>], iteration_bounds = array<i64: 2, 1>, scalar_prefetch = 0 : i64, scratch_operands = 0 : i64, tpu.core_type = #tpu.core_type<tc>, window_params = [{transform_indices = @transform_0, window_bounds = array<i64: 1, 8, 4>}, {pipeline_mode = #tpu.pipeline_mode<synchronous>, transform_indices = @transform_1, window_bounds = array<i64: 8, 1>}, {transform_indices = @transform_2, window_bounds = array<i64: 1, 4, 4096>}, {transform_indices = @transform_3, window_bounds = array<i64: 1, 8, 4096>}]} {
    %c0 = arith.constant 0 : index
    %c0_0 = arith.constant 0 : index
    %c0_1 = arith.constant 0 : index
    %0 = vector.load %arg2[%c0, %c0_0, %c0_1] : memref<1x8x4xf32, #tpu.memory_space<vmem>>, vector<1x8x4xf32>
    %1 = vector.shape_cast %0 : vector<1x8x4xf32> to vector<8x4xf32>
    %c0_2 = arith.constant 0 : index
    %c0_3 = arith.constant 0 : index
    %c0_4 = arith.constant 0 : index
    %2 = vector.load %arg4[%c0_2, %c0_3, %c0_4] : memref<1x4x4096xf32, #tpu.memory_space<vmem>>, vector<1x4x4096xf32>
    %3 = vector.shape_cast %2 : vector<1x4x4096xf32> to vector<4x4096xf32>
    %cst = arith.constant dense<0.000000e+00> : vector<8x4096xf32>
    %4 = tpu.matmul %1, %3, %cst {dimension_numbers = #tpu.dot_dimension_numbers<[1], [0], [0], [1], [0, 0, 1, 1], [], []>} : vector<8x4xf32>, vector<4x4096xf32>, vector<8x4096xf32> -> vector<8x4096xf32>
    %c0_5 = arith.constant 0 : index
    %c0_6 = arith.constant 0 : index
    %5 = vector.load %arg3[%c0_5, %c0_6] : memref<8x1xf32, #tpu.memory_space<vmem>>, vector<8x1xf32>
    %6 = vector.broadcast %5 : vector<8x1xf32> to vector<8x4096xf32>
    %7 = arith.addf %4, %6 : vector<8x4096xf32>
    %c0_7 = arith.constant 0 : index
    %c0_8 = arith.constant 0 : index
    %c0_9 = arith.constant 0 : index
    %8 = vector.load %arg5[%c0_7, %c0_8, %c0_9] : memref<1x8x4096xf32, #tpu.memory_space<vmem>>, vector<1x8x4096xf32>
    %9 = vector.shape_cast %8 : vector<1x8x4096xf32> to vector<8x4096xf32>
    %10 = vector.shape_cast %7 : vector<8x4096xf32> to vector<1x8x4096xf32>
    tpu.vector_store %arg5[%c0_7, %c0_8, %c0_9], %10 {strides = array<i32>} : memref<1x8x4096xf32, #tpu.memory_space<vmem>>, vector<1x8x4096xf32>,
    return
  }
  func.func @transform_0(%arg0: i32, %arg1: i32) -> (i32, i32, i32) {
    %c0_i32 = arith.constant 0 : i32
    %c0_i32_0 = arith.constant 0 : i32
    %c0_i32_1 = arith.constant 0 : i32
    return %arg0, %c0_i32, %c0_i32_0 : i32, i32, i32
  }
  func.func @transform_1(%arg0: i32, %arg1: i32) -> (i32, i32) {
    %c0_i32 = arith.constant 0 : i32
    %c0_i32_0 = arith.constant 0 : i32
    %c0_i32_1 = arith.constant 0 : i32
    return %c0_i32, %c0_i32_0 : i32, i32
  }
  func.func @transform_2(%arg0: i32, %arg1: i32) -> (i32, i32, i32) {
    %c0_i32 = arith.constant 0 : i32
    %c0_i32_0 = arith.constant 0 : i32
    return %arg0, %c0_i32, %arg1 : i32, i32, i32
  }
  func.func @transform_3(%arg0: i32, %arg1: i32) -> (i32, i32, i32) {
    %c0_i32 = arith.constant 0 : i32
    %c0_i32_0 = arith.constant 0 : i32
    return %arg0, %c0_i32, %arg1 : i32, i32, i32
  }
}

</mosaic_0001>

<bundles_post_ra>
// kernel: tpu_custom_call.1
= control target key start
LH: loop header
LB: loop body
LE: loop exit
PB: predicated region body
PF: predicated region fallthrough
CT: control target
= control target key end

     0   :  { %8 = vsyncpa [#allocation3], 0  ;;  %s1767_s0 = inlined_call_operand.vmem [shape: f32[2,8,4], index: 0, kind: input, shape index: {}]   ;;  %s1768_s1 = inlined_call_operand.vmem [shape: f32[8,1], index: 1, kind: input, shape index: {}]   ;;  %s1769_s2 = inlined_call_operand.hbm [shape: f32[2,4,4096], index: 2, kind: input, shape index: {}]   ;;  %s1770_s3 = inlined_call_operand.hbm [shape: f32[2,8,4096], index: 3, kind: output, shape index: {}]  }
   0x1   :  { %10 = vsyncpa [#allocation3 + $0x1], 0 }
   0x2   :  { %11 = vsyncpa [#allocation4], 0 }
   0x3   :  { %13 = vsyncpa [#allocation4 + $0x1], 0  ;;  %s1453_s12 = smov 0   ;;  %s1455_s13 = smov 0  }
   0x4   :  { %s1457_s14 = smov 0   ;;  %s1459_s15 = smov 0  }
   0x5   :  { %s1461_s16 = smov 0   ;;  %s1463_s17 = smov 0  }
   0x6 LB: > { %s1172_s18 = sadd.s32 4294967295, %s1430_s17   ;;  %s1173_s19 = sadd.s32 4294967294, %s1430_s17   ;;  %s1430_s17 = sphi %s1463_s17, %s19_s17   ;;  %s1426_s16 = sphi %s1461_s16, %s1779_s16   ;;  %s1422_s15 = sphi %s1459_s15, %s1778_s15   ;;  %s1418_s14 = sphi %s1457_s14, %s1777_s14   ;;  %s1414_s13 = sphi %s1455_s13, %s1776_s13   ;;  %s1410_s12 = sphi %s1453_s12, %s1775_s12  }
   0x7   : > { %s31_s20 = sadd.s32 1, %s1426_s16  ;;  %s87_s21 = sadd.s32 1, %s1418_s14 }
   0x8   : > { %p33_p0 = scmp.ge.s32.totalorder %s31_s20, 2  ;;  %p94_p1 = scmp.ne.s32.totalorder %s1418_s14, %s1414_s13 }
   0x9   : > { %p95_p2 = scmp.eq.s32.totalorder %s1430_s17, 0  ;;  %p100_p3 = scmp.ne.s32.totalorder %s1414_s13, %s1410_s12 }
   0xa   : > { %s1781_s20 = smov (%p33_p0, %s31_s20), 0  ;;  %p101_p5 = scmp.eq.s32.totalorder %s1172_s18, 0 }
   0xb   : > { %p1494_p4 = por %p95_p2, %p94_p1  ;;  %s82_s23 = ssub.s32 %s1426_s16, %s1781_s20 }
   0xc   : > { %p126_p6 = scmp.eq.s32.totalorder %s1172_s18, 1  ;;  %p85_p7 = scmp.eq.s32.totalorder %s82_s23, 0 }
   0xd   : > { %p1500_p8 = por %p101_p5, %p100_p3  ;;  %p132_p10 = scmp.eq.s32.totalorder %s1173_s19, 1 }
   0xe   : > { %p1504_p9 = por %p126_p6, %p94_p1  ;;  %p1175_p12 = scmp.ge.s32.totalorder %s1430_s17, 2 }
   0xf   : > { %s1509_s26 = scalar_select %p85_p7, %s1418_s14, %s87_s21  }
  0x10   : > { %p1511_p11 = por %p132_p10, %p100_p3  ;;  %p1266_p13 = scmp.lt.s32.totalorder %s1430_s17, 2 }
  0x11   : > { %s162_s28 = sand.u32 1, %s1418_s14   ;;  %s1252_s30 = sshll.u32 %s1426_s16, 7 }
  0x12   : > { %s1176_s29 = sshll.u32 %s162_s28, 7  ;;  %s173_s6 = scalar_lea.hbm %s1769_s2, %s1252_s30 }
  0x13   : > { %s166_s7 = scalar_lea.vmem [#allocation2], %s1176_s29  ;;  %s175_s9 = sshll.u32 %s173_s6, 4  ;;  %s176_s9 = int_to_ptr.hbm [resolvable:$true] %s175_s9 }
  0x14   : > { %s177_s8 = sshll.u32 %s166_s7, 4  ;;  %p1259_p0 = pnand %p1266_p13, %p1494_p4  ;;  %s178_s8 = int_to_ptr.vmem [resolvable:$true] %s177_s8 }
  0x15   : > { %p1179_p1 = scmp.ge.s32.totalorder %s1430_s17, 1  ;;  %p182_p2 = scmp.lt.s32.totalorder %s1430_s17, 3 }
  0x16   : > { %s163_s10 = scalar_lea.sflag [#allocation3], %s162_s28 }
  0x17   : > { %1261 = dma.hbm_to_vmem [thread:$0]  (!%p1259_p0), %s176_s9, 2048, %s178_s8, %s163_s10  }
  0x18   : > { %p183_p3 = pnand %p1179_p1, %p182_p2 }
  0x19   : > { %s1527_s11 = sand.u32 (!%p183_p3), 1, %s1414_s13  }
  0x1a   : > { %186 = sbr.rel (%p183_p3) target bundleno = 236 (0xec), region = 32  ;;  %s1180_s18 = sshll.u32 (!%p183_p3), %s1527_s11, 7 }
  0x1b   : > { %s189_s19 = scalar_lea.sflag (!%p183_p3), [#allocation3], %s1527_s11  ;;  %s1531_s21 = scalar_lea.vmem (!%p183_p3), [#allocation2], %s1180_s18 }
  0x1f   : > { %1401 = dma.done.wait (%p1500_p8), %s189_s19, 2048  }
  0x20   : > { %1403 = vsyncadd (%p1500_p8), %s189_s19, 4294965248  ;;  %p220_p4 = scmp.lt.s32.totalorder %s1422_s15, 1  ;;  %v1432_v0 = vmov 0   ;;  %v228_v1 = vld [vmem:[%s1531_s21 + $0x8] sm:$0xff]  ;;  %v230_v2 = vld [vmem:[%s1531_s21 + $0x18] sm:$0xff]  ;;  %vm320_vm0 = vcmask 1043456  }
  0x21   : > { %1317 = vset.pattern.permute.xlu0 %v1432_v0  ;;  %267 = vst [vmem:[#allocation1 + $0x10] ss:$2 sm:$0xff] %v228_v1  ;;  %v227_v3 = vld [vmem:[%s1531_s21] sm:$0xff]  ;;  %v229_v4 = vld [vmem:[%s1531_s21 + $0x10] sm:$0xff]  ;;  %v243_v5 = vld [vmem:[%s1768_s1] sm:$0xff]  ;;  %vm316_vm1 = vcmask 31744  }
  0x22   : > { %s221_s22 = scalar_select %p220_p4, %s1422_s15, 1  ;;  %271 = vst [vmem:[#allocation1 + $0x30] ss:$2 sm:$0xff] %v230_v2  ;;  %246 = vperm.xlu0 %1317, %v243_v5   ;;  %v232_v6 = vld [vmem:[%s1531_s21 + $0x28] sm:$0xff]  ;;  %v234_v8 = vld [vmem:[%s1531_s21 + $0x38] sm:$0xff]  ;;  %v231_v12 = vld [vmem:[%s1531_s21 + $0x20] sm:$0xff] }
  0x23   : > { %265 = vst [vmem:[#allocation1] ss:$2 sm:$0xff] %v227_v3  ;;  %v233_v16 = vld [vmem:[%s1531_s21 + $0x30] sm:$0xff]  ;;  %v236_v19 = vld [vmem:[%s1531_s21 + $0x48] sm:$0xff]  ;;  %v235_v22 = vld [vmem:[%s1531_s21 + $0x40] sm:$0xff]  ;;  %s1181_s5 = sshll.u32 %s1527_s11, 8 }
  0x24   : > { %s1182_s23 = sshll.u32 %s221_s22, 3  ;;  %269 = vst [vmem:[#allocation1 + $0x20] ss:$2 sm:$0xff] %v229_v4  ;;  %v238_v23 = vld [vmem:[%s1531_s21 + $0x58] sm:$0xff]  ;;  %v237_v28 = vld [vmem:[%s1531_s21 + $0x50] sm:$0xff]  ;;  %v240_v31 = vld [vmem:[%s1531_s21 + $0x68] sm:$0xff] }
  0x25   : > { %s223_s29 = scalar_lea.vmem %s1767_s0, %s1182_s23  ;;  %v239_v34 = vld [vmem:[%s1531_s21 + $0x60] sm:$0xff]  ;;  %v242_v35 = vld [vmem:[%s1531_s21 + $0x78] sm:$0xff]  ;;  %v241_v38 = vld [vmem:[%s1531_s21 + $0x70] sm:$0xff]  ;;  %s1664_s6 = scalar_lea.vmem [#allocation5], %s1181_s5 }
  0x26   : > { %v1550_v7 = vld [vmem:[%s223_s29] sm:$0xff]  ;;  %s1253_s7 = sshll.u32 %s1422_s15, 8  ;;  %s1073_s18 = sshll.u32 %s1664_s6, 4  ;;  %s1074_s18 = int_to_ptr.vmem [resolvable:$true] %s1073_s18 }
  0x27   : > { %s1071_s10 = scalar_lea.hbm %s1770_s3, %s1253_s7  ;;  %s1058_s15 = scalar_lea.sflag [#allocation4], %s1527_s11 }
  0x28   : > { %v274_v9 = vld.sshfl [vmem:[#allocation1 + $0x10] sm:$0xff pattern:$0x75316420]  ;;  %v275_v10 = vld.sshfl [vmem:[#allocation1 + $0x18] sm:$0xff pattern:$0x75316420] }
  0x29   : > { %1187 = vmatpush.msk.msra.mxu2 %vm320_vm0, %v274_v9  ;;  %281 = vst [vmem:[#allocation1 + $0x10] ss:$2 sm:$0xff] %v232_v6  ;;  %1189 = vmatpush.msk.msra.mxu3 %vm320_vm0, %v275_v10  ;;  %v278_v11 = vld.sshfl [vmem:[#allocation1 + $0x30] sm:$0xff pattern:$0x75316420]  ;;  %s1075_s19 = sshll.u32 %s1071_s10, 4  ;;  %s1076_s19 = int_to_ptr.hbm [resolvable:$true] %s1075_s19 }
  0x2a   : > { %1188 = vmatmul.msk.f32.vlgmr.msra.gmra.mxu2 %vm316_vm1, %v1550_v7  ;;  %1190 = vmatmul.msk.f32.vlgmr.msra.gmra.mxu3 %vm316_vm1, %v1550_v7  ;;  %v279_v13 = vld.sshfl [vmem:[#allocation1 + $0x38] sm:$0xff pattern:$0x75316420]  ;;  %v272_v14 = vld.sshfl [vmem:[#allocation1] sm:$0xff pattern:$0x75316420] }
  0x2b   : > { %1195 = vmatpush.msk.msrb.mxu2 %vm320_vm0, %v278_v11  ;;  %283 = vst [vmem:[#allocation1 + $0x30] ss:$2 sm:$0xff] %v234_v8  ;;  %1197 = vmatpush.msk.msrb.mxu3 %vm320_vm0, %v279_v13  ;;  %v273_v15 = vld.sshfl [vmem:[#allocation1 + $0x8] sm:$0xff pattern:$0x75316420]  ;;  %s1362_s21 = sshra.s32 %s1076_s19, 4  ;;  %s1363_s21 = int_to_ptr.hbm [resolvable:$true] %s1362_s21 }
  0x2c   : > { %1183 = vmatpush.msk.msra.mxu0 %vm320_vm0, %v272_v14  ;;  %280 = vst [vmem:[#allocation1] ss:$2 sm:$0xff] %v231_v12  ;;  %1185 = vmatpush.msk.msra.mxu1 %vm320_vm0, %v273_v15  ;;  %v276_v17 = vld.sshfl [vmem:[#allocation1 + $0x20] sm:$0xff pattern:$0x75316420]  ;;  %s1364_s22 = scalar_lea.hbm %s1363_s21, 256  ;;  %p1369_p8 = scmp.lt.s32.totalorder %s1363_s21, %s1770_s3 }
  0x2d   : > { %1184 = vmatmul.msk.f32.vlgmr.msra.gmra.mxu0 %vm316_vm1, %v1550_v7  ;;  %1186 = vmatmul.msk.f32.vlgmr.msra.gmra.mxu1 %vm316_vm1, %v1550_v7  ;;  %v277_v18 = vld.sshfl [vmem:[#allocation1 + $0x28] sm:$0xff pattern:$0x75316420]  ;;  %p1365_p5 = scmp.ne.s32.totalorder %s1363_s21, %s1364_s22  ;;  %s1368_s28 = scalar_lea.hbm %s1770_s3, 512 }
  0x2e   : > { %1191 = vmatpush.msk.msrb.mxu0 %vm320_vm0, %v276_v17  ;;  %282 = vst [vmem:[#allocation1 + $0x20] ss:$2 sm:$0xff] %v233_v16  ;;  %1193 = vmatpush.msk.msrb.mxu1 %vm320_vm0, %v277_v18  ;;  %p1370_p10 = scmp.lt.s32.totalorder %s1368_s28, %s1364_s22 }
  0x2f   : > { %p1366_p6 = pnand %p1365_p5, %p1504_p9 }
  0x30   : > { %v286_v20 = vld.sshfl [vmem:[#allocation1 + $0x10] sm:$0xff pattern:$0x75316420]  ;;  %v287_v21 = vld.sshfl [vmem:[#allocation1 + $0x18] sm:$0xff pattern:$0x75316420]  ;;  %p1371_p13 = por %p1370_p10, %p1369_p8 }
  0x31   : > { %1203 = vmatpush.msk.msra.mxu2 %vm320_vm0, %v286_v20  ;;  %293 = vst [vmem:[#allocation1 + $0x10] ss:$2 sm:$0xff] %v236_v19  ;;  %1205 = vmatpush.msk.msra.mxu3 %vm320_vm0, %v287_v21  ;;  %p1367_p7 = pneg %p1366_p6 }
  0x32   : > { %1196 = vmatmul.msk.f32.vlgmr.msrb.gmra.mxu2 %vm316_vm1, %v1550_v7  ;;  %1198 = vmatmul.msk.f32.vlgmr.msrb.gmra.mxu3 %vm316_vm1, %v1550_v7  ;;  %v290_v24 = vld.sshfl [vmem:[#allocation1 + $0x30] sm:$0xff pattern:$0x75316420]  ;;  %v291_v25 = vld.sshfl [vmem:[#allocation1 + $0x38] sm:$0xff pattern:$0x75316420] }
  0x33   : > { %v284_v26 = vld.sshfl [vmem:[#allocation1] sm:$0xff pattern:$0x75316420]  ;;  %v285_v27 = vld.sshfl [vmem:[#allocation1 + $0x8] sm:$0xff pattern:$0x75316420]  ;;  %1211 = vmatpush.msk.msrb.mxu2 %vm320_vm0, %v290_v24  ;;  %1213 = vmatpush.msk.msrb.mxu3 %vm320_vm0, %v291_v25  ;;  %p1372_p0 = pnand %p1371_p13, %p1367_p7 }
  0x34   : > { %1199 = vmatpush.msk.msra.mxu0 %vm320_vm0, %v284_v26  ;;  %292 = vst [vmem:[#allocation1] ss:$2 sm:$0xff] %v235_v22  ;;  %1201 = vmatpush.msk.msra.mxu1 %vm320_vm0, %v285_v27 }
  0x35   : > { %1192 = vmatmul.msk.f32.vlgmr.msrb.gmra.mxu0 %vm316_vm1, %v1550_v7  ;;  %1194 = vmatmul.msk.f32.vlgmr.msrb.gmra.mxu1 %vm316_vm1, %v1550_v7  ;;  %295 = vst [vmem:[#allocation1 + $0x30] ss:$2 sm:$0xff] %v238_v23  ;;  %v288_v29 = vld.sshfl [vmem:[#allocation1 + $0x20] sm:$0xff pattern:$0x75316420] }
  0x36   : > { %1207 = vmatpush.msk.msrb.mxu0 %vm320_vm0, %v288_v29  ;;  %v289_v30 = vld.sshfl [vmem:[#allocation1 + $0x28] sm:$0xff pattern:$0x75316420] }
  0x37   : > { %294 = vst [vmem:[#allocation1 + $0x20] ss:$2 sm:$0xff] %v237_v28  ;;  %1209 = vmatpush.msk.msrb.mxu1 %vm320_vm0, %v289_v30 }
  0x38   : > { %v298_v32 = vld.sshfl [vmem:[#allocation1 + $0x10] sm:$0xff pattern:$0x75316420]  ;;  %v299_v33 = vld.sshfl [vmem:[#allocation1 + $0x18] sm:$0xff pattern:$0x75316420] }
  0x39   : > { %305 = vst [vmem:[#allocation1 + $0x10] ss:$2 sm:$0xff] %v240_v31 }
  0x3a   : > { %1204 = vmatmul.msk.f32.vlgmr.msra.gmra.mxu2 %vm316_vm1, %v1550_v7  ;;  %1206 = vmatmul.msk.f32.vlgmr.msra.gmra.mxu3 %vm316_vm1, %v1550_v7 }
  0x3b   : > { %1219 = vmatpush.msk.msra.mxu2 %vm320_vm0, %v298_v32  ;;  %1221 = vmatpush.msk.msra.mxu3 %vm320_vm0, %v299_v33  ;;  %v296_v36 = vld.sshfl [vmem:[#allocation1] sm:$0xff pattern:$0x75316420]  ;;  %v297_v37 = vld.sshfl [vmem:[#allocation1 + $0x8] sm:$0xff pattern:$0x75316420] }
  0x3c   : > { %304 = vst [vmem:[#allocation1] ss:$2 sm:$0xff] %v239_v34  ;;  %v302_v39 = vld.sshfl [vmem:[#allocation1 + $0x30] sm:$0xff pattern:$0x75316420] }
  0x3d   : > { %1200 = vmatmul.msk.f32.vlgmr.msra.gmra.mxu0 %vm316_vm1, %v1550_v7  ;;  %1202 = vmatmul.msk.f32.vlgmr.msra.gmra.mxu1 %vm316_vm1, %v1550_v7  ;;  %v303_v40 = vld.sshfl [vmem:[#allocation1 + $0x38] sm:$0xff pattern:$0x75316420] }
  0x3e   : > { %1215 = vmatpush.msk.msra.mxu0 %vm320_vm0, %v296_v36  ;;  %1217 = vmatpush.msk.msra.mxu1 %vm320_vm0, %v297_v37  ;;  %307 = vst [vmem:[#allocation1 + $0x30] ss:$2 sm:$0xff] %v242_v35  ;;  %v300_v41 = vld.sshfl [vmem:[#allocation1 + $0x20] sm:$0xff pattern:$0x75316420] }
  0x3f   : > { %v301_v42 = vld.sshfl [vmem:[#allocation1 + $0x28] sm:$0xff pattern:$0x75316420] }
  0x40   : > { %306 = vst [vmem:[#allocation1 + $0x20] ss:$2 sm:$0xff] %v241_v38  ;;  %v310_v43 = vld.sshfl [vmem:[#allocation1 + $0x10] sm:$0xff pattern:$0x75316420] }
  0x41   : > { %v311_v44 = vld.sshfl [vmem:[#allocation1 + $0x18] sm:$0xff pattern:$0x75316420] }
  0x42   : > { %1212 = vmatmul.msk.f32.vlgmr.msrb.gmra.mxu2 %vm316_vm1, %v1550_v7  ;;  %1214 = vmatmul.msk.f32.vlgmr.msrb.gmra.mxu3 %vm316_vm1, %v1550_v7 }
  0x43   : > { %1227 = vmatpush.msk.msrb.mxu2 %vm320_vm0, %v302_v39  ;;  %1229 = vmatpush.msk.msrb.mxu3 %vm320_vm0, %v303_v40  ;;  %v308_v45 = vld.sshfl [vmem:[#allocation1] sm:$0xff pattern:$0x75316420]  ;;  %v309_v46 = vld.sshfl [vmem:[#allocation1 + $0x8] sm:$0xff pattern:$0x75316420] }
  0x45   : > { %1208 = vmatmul.msk.f32.vlgmr.msrb.gmra.mxu0 %vm316_vm1, %v1550_v7  ;;  %1210 = vmatmul.msk.f32.vlgmr.msrb.gmra.mxu1 %vm316_vm1, %v1550_v7  ;;  %v314_v47 = vld.sshfl [vmem:[#allocation1 + $0x30] sm:$0xff pattern:$0x75316420]  ;;  %v315_v48 = vld.sshfl [vmem:[#allocation1 + $0x38] sm:$0xff pattern:$0x75316420] }
  0x46   : > { %1223 = vmatpush.msk.msrb.mxu0 %vm320_vm0, %v300_v41  ;;  %1225 = vmatpush.msk.msrb.mxu1 %vm320_vm0, %v301_v42 }
  0x47   : > { %v312_v49 = vld.sshfl [vmem:[#allocation1 + $0x20] sm:$0xff pattern:$0x75316420]  ;;  %v313_v50 = vld.sshfl [vmem:[#allocation1 + $0x28] sm:$0xff pattern:$0x75316420] }
  0x4a   : > { %1220 = vmatmul.msk.f32.vlgmr.msra.gmra.mxu2 %vm316_vm1, %v1550_v7  ;;  %1222 = vmatmul.msk.f32.vlgmr.msra.gmra.mxu3 %vm316_vm1, %v1550_v7 }
  0x4b   : > { %1235 = vmatpush.msk.msra.mxu2 %vm320_vm0, %v310_v43  ;;  %1237 = vmatpush.msk.msra.mxu3 %vm320_vm0, %v311_v44 }
  0x4d   : > { %1216 = vmatmul.msk.f32.vlgmr.msra.gmra.mxu0 %vm316_vm1, %v1550_v7  ;;  %1218 = vmatmul.msk.f32.vlgmr.msra.gmra.mxu1 %vm316_vm1, %v1550_v7 }
  0x4e   : > { %1231 = vmatpush.msk.msra.mxu0 %vm320_vm0, %v308_v45  ;;  %1233 = vmatpush.msk.msra.mxu1 %vm320_vm0, %v309_v46 }
  0x52   : > { %1228 = vmatmul.msk.f32.vlgmr.msrb.gmra.mxu2 %vm316_vm1, %v1550_v7  ;;  %1230 = vmatmul.msk.f32.vlgmr.msrb.gmra.mxu3 %vm316_vm1, %v1550_v7 }
  0x53   : > { %1243 = vmatpush.msk.msrb.mxu2 %vm320_vm0, %v314_v47  ;;  %1245 = vmatpush.msk.msrb.mxu3 %vm320_vm0, %v315_v48 }
  0x55   : > { %1224 = vmatmul.msk.f32.vlgmr.msrb.gmra.mxu0 %vm316_vm1, %v1550_v7  ;;  %1226 = vmatmul.msk.f32.vlgmr.msrb.gmra.mxu1 %vm316_vm1, %v1550_v7 }
  0x56   : > { %1239 = vmatpush.msk.msrb.mxu0 %vm320_vm0, %v312_v49  ;;  %1241 = vmatpush.msk.msrb.mxu1 %vm320_vm0, %v313_v50 }
  0x5a   : > { %1236 = vmatmul.msk.f32.vlgmr.msra.gmra.mxu2 %vm316_vm1, %v1550_v7  ;;  %1238 = vmatmul.msk.f32.vlgmr.msra.gmra.mxu3 %vm316_vm1, %v1550_v7 }
  0x5d   : > { %1232 = vmatmul.msk.f32.vlgmr.msra.gmra.mxu0 %vm316_vm1, %v1550_v7  ;;  %1234 = vmatmul.msk.f32.vlgmr.msra.gmra.mxu1 %vm316_vm1, %v1550_v7 }
  0x62   : > { %1244 = vmatmul.msk.f32.vlgmr.msrb.gmra.mxu2 %vm316_vm1, %v1550_v7  ;;  %1246 = vmatmul.msk.f32.vlgmr.msrb.gmra.mxu3 %vm316_vm1, %v1550_v7 }
  0x65   : > { %1240 = vmatmul.msk.f32.vlgmr.msrb.gmra.mxu0 %vm316_vm1, %v1550_v7  ;;  %1242 = vmatmul.msk.f32.vlgmr.msrb.gmra.mxu1 %vm316_vm1, %v1550_v7 }
  0x94   : > { %v1660_v51 = vpop.permute.xlu0 %246 }
  0xaa   : > { %v402_v52 = vpop.f32.mrf.mxu0  ;;  %v422_v53 = vpop.f32.mrf.mxu1 }
  0xab   : > { %v403_v54 = vadd.f32 %v402_v52, %v1660_v51  ;;  %v423_v55 = vadd.f32 %v422_v53, %v1660_v51 }
  0xad   : > { %1025 = vst [vmem:[%s1664_s6] sm:$0xff] %v403_v54  ;;  %v442_v56 = vpop.f32.mrf.mxu2  ;;  %v462_v57 = vpop.f32.mrf.mxu3 }
  0xae   : > { %1026 = vst [vmem:[%s1664_s6 + $0x8] sm:$0xff] %v423_v55  ;;  %v443_v58 = vadd.f32 %v442_v56, %v1660_v51  ;;  %v463_v59 = vadd.f32 %v462_v57, %v1660_v51 }
  0xb0   : > { %1027 = vst [vmem:[%s1664_s6 + $0x10] sm:$0xff] %v443_v58 }
  0xb1   : > { %1028 = vst [vmem:[%s1664_s6 + $0x18] sm:$0xff] %v463_v59 }
  0xb2   : > { %v482_v60 = vpop.f32.mrf.mxu0  ;;  %v502_v61 = vpop.f32.mrf.mxu1 }
  0xb3   : > { %v483_v62 = vadd.f32 %v482_v60, %v1660_v51  ;;  %v503_v63 = vadd.f32 %v502_v61, %v1660_v51 }
  0xb5   : > { %1029 = vst [vmem:[%s1664_s6 + $0x20] sm:$0xff] %v483_v62  ;;  %v522_v0 = vpop.f32.mrf.mxu2  ;;  %v542_v1 = vpop.f32.mrf.mxu3 }
  0xb6   : > { %1030 = vst [vmem:[%s1664_s6 + $0x28] sm:$0xff] %v503_v63  ;;  %v523_v2 = vadd.f32 %v522_v0, %v1660_v51  ;;  %v543_v3 = vadd.f32 %v542_v1, %v1660_v51 }
  0xb8   : > { %1031 = vst [vmem:[%s1664_s6 + $0x30] sm:$0xff] %v523_v2 }
  0xb9   : > { %1032 = vst [vmem:[%s1664_s6 + $0x38] sm:$0xff] %v543_v3 }
  0xba   : > { %v562_v4 = vpop.f32.mrf.mxu0  ;;  %v582_v5 = vpop.f32.mrf.mxu1 }
  0xbb   : > { %v563_v6 = vadd.f32 %v562_v4, %v1660_v51  ;;  %v583_v7 = vadd.f32 %v582_v5, %v1660_v51 }
  0xbd   : > { %1033 = vst [vmem:[%s1664_s6 + $0x40] sm:$0xff] %v563_v6  ;;  %v602_v8 = vpop.f32.mrf.mxu2  ;;  %v622_v9 = vpop.f32.mrf.mxu3 }
  0xbe   : > { %1034 = vst [vmem:[%s1664_s6 + $0x48] sm:$0xff] %v583_v7  ;;  %v603_v10 = vadd.f32 %v602_v8, %v1660_v51  ;;  %v623_v11 = vadd.f32 %v622_v9, %v1660_v51 }
  0xc0   : > { %1035 = vst [vmem:[%s1664_s6 + $0x50] sm:$0xff] %v603_v10 }
  0xc1   : > { %1036 = vst [vmem:[%s1664_s6 + $0x58] sm:$0xff] %v623_v11 }
  0xc2   : > { %v642_v12 = vpop.f32.mrf.mxu0  ;;  %v662_v13 = vpop.f32.mrf.mxu1 }
  0xc3   : > { %v643_v14 = vadd.f32 %v642_v12, %v1660_v51  ;;  %v663_v15 = vadd.f32 %v662_v13, %v1660_v51 }
  0xc5   : > { %1037 = vst [vmem:[%s1664_s6 + $0x60] sm:$0xff] %v643_v14  ;;  %v682_v16 = vpop.f32.mrf.mxu2  ;;  %v702_v17 = vpop.f32.mrf.mxu3 }
  0xc6   : > { %1038 = vst [vmem:[%s1664_s6 + $0x68] sm:$0xff] %v663_v15  ;;  %v683_v18 = vadd.f32 %v682_v16, %v1660_v51  ;;  %v703_v19 = vadd.f32 %v702_v17, %v1660_v51 }
  0xc8   : > { %1039 = vst [vmem:[%s1664_s6 + $0x70] sm:$0xff] %v683_v18 }
  0xc9   : > { %1040 = vst [vmem:[%s1664_s6 + $0x78] sm:$0xff] %v703_v19 }
  0xca   : > { %v722_v20 = vpop.f32.mrf.mxu0  ;;  %v742_v21 = vpop.f32.mrf.mxu1 }
  0xcb   : > { %v723_v22 = vadd.f32 %v722_v20, %v1660_v51  ;;  %v743_v23 = vadd.f32 %v742_v21, %v1660_v51 }
  0xcd   : > { %1041 = vst [vmem:[%s1664_s6 + $0x80] sm:$0xff] %v723_v22  ;;  %v762_v24 = vpop.f32.mrf.mxu2  ;;  %v782_v25 = vpop.f32.mrf.mxu3 }
  0xce   : > { %1042 = vst [vmem:[%s1664_s6 + $0x88] sm:$0xff] %v743_v23  ;;  %v763_v26 = vadd.f32 %v762_v24, %v1660_v51  ;;  %v783_v27 = vadd.f32 %v782_v25, %v1660_v51 }
  0xd0   : > { %1043 = vst [vmem:[%s1664_s6 + $0x90] sm:$0xff] %v763_v26 }
  0xd1   : > { %1044 = vst [vmem:[%s1664_s6 + $0x98] sm:$0xff] %v783_v27 }
  0xd2   : > { %v802_v28 = vpop.f32.mrf.mxu0  ;;  %v822_v29 = vpop.f32.mrf.mxu1 }
  0xd3   : > { %v803_v30 = vadd.f32 %v802_v28, %v1660_v51  ;;  %v823_v31 = vadd.f32 %v822_v29, %v1660_v51 }
  0xd5   : > { %1045 = vst [vmem:[%s1664_s6 + $0xa0] sm:$0xff] %v803_v30  ;;  %v842_v32 = vpop.f32.mrf.mxu2  ;;  %v862_v33 = vpop.f32.mrf.mxu3 }
  0xd6   : > { %1046 = vst [vmem:[%s1664_s6 + $0xa8] sm:$0xff] %v823_v31  ;;  %v843_v34 = vadd.f32 %v842_v32, %v1660_v51  ;;  %v863_v35 = vadd.f32 %v862_v33, %v1660_v51 }
  0xd8   : > { %1047 = vst [vmem:[%s1664_s6 + $0xb0] sm:$0xff] %v843_v34 }
  0xd9   : > { %1048 = vst [vmem:[%s1664_s6 + $0xb8] sm:$0xff] %v863_v35 }
  0xda   : > { %v882_v36 = vpop.f32.mrf.mxu0  ;;  %v902_v37 = vpop.f32.mrf.mxu1 }
  0xdb   : > { %v883_v38 = vadd.f32 %v882_v36, %v1660_v51  ;;  %v903_v39 = vadd.f32 %v902_v37, %v1660_v51 }
  0xdd   : > { %1049 = vst [vmem:[%s1664_s6 + $0xc0] sm:$0xff] %v883_v38  ;;  %v922_v40 = vpop.f32.mrf.mxu2  ;;  %v942_v41 = vpop.f32.mrf.mxu3 }
  0xde   : > { %1050 = vst [vmem:[%s1664_s6 + $0xc8] sm:$0xff] %v903_v39  ;;  %v923_v42 = vadd.f32 %v922_v40, %v1660_v51  ;;  %v943_v43 = vadd.f32 %v942_v41, %v1660_v51 }
  0xe0   : > { %1051 = vst [vmem:[%s1664_s6 + $0xd0] sm:$0xff] %v923_v42 }
  0xe1   : > { %1052 = vst [vmem:[%s1664_s6 + $0xd8] sm:$0xff] %v943_v43 }
  0xe2   : > { %v962_v44 = vpop.f32.mrf.mxu0  ;;  %v982_v45 = vpop.f32.mrf.mxu1 }
  0xe3   : > { %v963_v46 = vadd.f32 %v962_v44, %v1660_v51  ;;  %v983_v47 = vadd.f32 %v982_v45, %v1660_v51 }
  0xe5   : > { %1053 = vst [vmem:[%s1664_s6 + $0xe0] sm:$0xff] %v963_v46  ;;  %v1002_v48 = vpop.f32.mrf.mxu2  ;;  %v1022_v49 = vpop.f32.mrf.mxu3 }
  0xe6   : > { %1054 = vst [vmem:[%s1664_s6 + $0xe8] sm:$0xff] %v983_v47  ;;  %v1003_v50 = vadd.f32 %v1002_v48, %v1660_v51  ;;  %v1023_v52 = vadd.f32 %v1022_v49, %v1660_v51 }
  0xe8   : > { %1055 = vst [vmem:[%s1664_s6 + $0xf0] sm:$0xff] %v1003_v50 }
  0xe9   : > { %1056 = vst [vmem:[%s1664_s6 + $0xf8] sm:$0xff] %v1023_v52 }
  0xea   : > { %1375 = shalt.err (!%p1372_p0)
}
  0xeb   : > { %1256 = dma.vmem_to_hbm [thread:$0]  (%p1504_p9), %s1074_s18, 4096, %s1076_s19, %s1058_s15  }
  0xec PF: > { %s1087_s11 = sand.u32 1, %s1410_s12   ;;  %p1263_p1 = pnand %p1175_p12, %p1511_p11 }
  0xed   : > { %s1088_s4 = scalar_lea.sflag [#allocation4], %s1087_s11 }
  0xee   : > { %p1264_p2 = pneg %p1263_p1 }
  0xf0   : > { %1405 = dma.done.wait (%p1264_p2), %s1088_s4, 4096  }
  0xf1   : > { %1407 = vsyncadd (%p1264_p2), %s1088_s4, 4294963200  ;;  %s19_s17 = sadd.s32 1, %s1430_s17   ;;  %s1775_s12 = smov %s1414_s13 }
  0xf2   : > { %p16_p3 = scmp.ge.s32.totalorder %s19_s17, 4   ;;  %s1776_s13 = smov %s1418_s14 }
  0xf3   : > { %s1777_s14 = smov %s1509_s26  ;;  %s1778_s15 = smov %s1426_s16 }
  0xf4   : > { %s1779_s16 = smov %s1781_s20  ;;  %18 = sbr.rel (!%p16_p3) target bundleno = 6 (0x6), region = 83 }
  0xf9   :  { %1094 = vsyncpa [#allocation3], 1 }
  0xfa   :  { %1096 = vsyncpa [#allocation3 + $0x1], 1 }
  0xfb   :  { %1097 = vsyncpa [#allocation4], 1 }
  0xfc   :  { %1099 = vsyncpa [#allocation4 + $0x1], 1 }

</bundles_post_ra>
